<compile_context>
chip_gen: v7x
topology: tpu7x:2x2x1
jax: 0.10.0
libtpu: 0.0.40
codegen_flags: <defaults>
</compile_context>

<pallas_src>
import jax
import jax.numpy as jnp
import numpy as np
from jax.experimental import pallas as pl
from jax.experimental.pallas import tpu as pltpu


_LANE = 128
_VMEM_LIMIT = 48 * 1024 * 1024  # explicit scoped-VMEM budget (fits v5e/v6e/v7x)


def _round_up(x, m):
    return (x + m - 1) // m * m


def _pad2(a, rows, cols):
    r, c = a.shape
    return jnp.pad(a, ((0, rows - r), (0, cols - c)))


def _choose_tiles(n):
    """Return (n_pad, row_tile, k_tile) for the adjacency matmuls."""
    if n <= 512:                       # small graphs: one tile per axis
        n_pad = _round_up(n, _LANE)
        return n_pad, n_pad, n_pad
    # Larger graphs: 512x512 bf16 adjacency tiles (512 KiB each) double-buffer
    # comfortably inside v7x's 64 MiB VMEM while keeping the DMA pipeline full
    # and minimizing re-reads of the projection arrays.
    return _round_up(n, 512), 512, 512


# ---------------------------------------------------------------------------
# Kernels
# ---------------------------------------------------------------------------
def _proj_kernel(x_ref, w_ref, b_ref, p_ref, s_ref):
    """[P | S] = X @ [W_neigh | W_self];  P -> bf16,  S = S_half + b -> f32."""
    h = p_ref.shape[-1]
    xw = jnp.dot(x_ref[...], w_ref[...], preferred_element_type=jnp.float32)
    p_ref[...] = xw[:, :h].astype(p_ref.dtype)          # lane-aligned split
    s_ref[...] = xw[:, h:] + b_ref[...]


def _agg_proj_kernel(a_ref, p1_ref, s1_ref, w2_ref, b2_ref,
                     p2_ref, s2_ref, acc_ref):
    """h1 = relu(A @ P1 + S1); fused: [P2 | S2] = h1 @ [Wn2 | Ws2] (+ b2)."""
    k = pl.program_id(1)

    @pl.when(k == 0)
    def _():
        acc_ref[...] = jnp.zeros_like(acc_ref)

    # bf16 MXU matmul, f32 accumulation.
    acc_ref[...] += jnp.dot(a_ref[...], p1_ref[...],
                            preferred_element_type=jnp.float32)

    @pl.when(k == pl.num_programs(1) - 1)
    def _():
        h2 = p2_ref.shape[-1]
        h1 = jnp.maximum(acc_ref[...] + s1_ref[...], 0.0)        # f32 epilogue
        xw2 = jnp.dot(h1.astype(jnp.bfloat16), w2_ref[...],
                      preferred_element_type=jnp.float32)
        p2_ref[...] = xw2[:, :h2].astype(p2_ref.dtype)
        s2_ref[...] = xw2[:, h2:] + b2_ref[...]


def _agg_out_kernel(a_ref, p2_ref, s2_ref, o_ref, acc_ref):
    """out = A @ P2 + S2 (no ReLU on the last layer)."""
    k = pl.program_id(1)

    @pl.when(k == 0)
    def _():
        acc_ref[...] = jnp.zeros_like(acc_ref)

    acc_ref[...] += jnp.dot(a_ref[...], p2_ref[...],
                            preferred_element_type=jnp.float32)

    @pl.when(k == pl.num_programs(1) - 1)
    def _():
        o_ref[...] = acc_ref[...] + s2_ref[...]


# ---------------------------------------------------------------------------
# pallas_call wrappers
# ---------------------------------------------------------------------------
def _project(x_bf, w1, b1, tm):
    n_pad, f_pad = x_bf.shape
    hh = w1.shape[1]            # 2 * h1_pad  (concatenated neigh | self)
    h_pad = hh // 2
    grid = (n_pad // tm,)
    flops = 2 * n_pad * f_pad * hh
    bytes_accessed = (x_bf.size * 2 + w1.size * 2 + b1.size * 4
                      + n_pad * h_pad * (2 + 4))
    return pl.pallas_call(
        _proj_kernel,
        out_shape=(jax.ShapeDtypeStruct((n_pad, h_pad), jnp.bfloat16),
                   jax.ShapeDtypeStruct((n_pad, h_pad), jnp.float32)),
        grid=grid,
        in_specs=[
            pl.BlockSpec((tm, f_pad), lambda i: (i, 0)),       # X row tile
            pl.BlockSpec((f_pad, hh), lambda i: (0, 0)),       # [Wn | Ws]
            pl.BlockSpec((1, h_pad), lambda i: (0, 0)),        # bias
        ],
        out_specs=(pl.BlockSpec((tm, h_pad), lambda i: (i, 0)),
                   pl.BlockSpec((tm, h_pad), lambda i: (i, 0))),
        compiler_params=pltpu.CompilerParams(
            dimension_semantics=("parallel",),
            vmem_limit_bytes=_VMEM_LIMIT),
        cost_estimate=pl.CostEstimate(flops=flops, transcendentals=0,
                                      bytes_accessed=bytes_accessed),
    )(x_bf, w1, b1)


def _aggregate_relu_project(a_bf, p1, s1, w2, b2, tm, tk):
    n_pad = a_bf.shape[0]
    h1_pad = p1.shape[1]
    hh2 = w2.shape[1]           # 2 * h2_pad
    h2_pad = hh2 // 2
    grid = (n_pad // tm, n_pad // tk)
    flops = 2 * n_pad * n_pad * h1_pad + 2 * n_pad * h1_pad * hh2
    bytes_accessed = (a_bf.size * 2 + p1.size * 2 * grid[0] + s1.size * 4
                      + w2.size * 2 + b2.size * 4
                      + n_pad * h2_pad * (2 + 4))
    return pl.pallas_call(
        _agg_proj_kernel,
        out_shape=(jax.ShapeDtypeStruct((n_pad, h2_pad), jnp.bfloat16),
                   jax.ShapeDtypeStruct((n_pad, h2_pad), jnp.float32)),
        grid=grid,
        in_specs=[
            pl.BlockSpec((tm, tk), lambda m, k: (m, k)),        # A tile
            pl.BlockSpec((tk, h1_pad), lambda m, k: (k, 0)),    # P1 source tile
            pl.BlockSpec((tm, h1_pad), lambda m, k: (m, 0)),    # S1 row tile
            pl.BlockSpec((h1_pad, hh2), lambda m, k: (0, 0)),   # [Wn2 | Ws2]
            pl.BlockSpec((1, h2_pad), lambda m, k: (0, 0)),     # b2
        ],
        out_specs=(pl.BlockSpec((tm, h2_pad), lambda m, k: (m, 0)),
                   pl.BlockSpec((tm, h2_pad), lambda m, k: (m, 0))),
        scratch_shapes=[pltpu.VMEM((tm, h1_pad), jnp.float32)],
        compiler_params=pltpu.CompilerParams(
            dimension_semantics=("parallel", "arbitrary"),
            vmem_limit_bytes=_VMEM_LIMIT),
        cost_estimate=pl.CostEstimate(flops=flops, transcendentals=0,
                                      bytes_accessed=bytes_accessed),
    )(a_bf, p1, s1, w2, b2)


def _aggregate_add(a_bf, p2, s2, tm, tk):
    n_pad = a_bf.shape[0]
    h2_pad = p2.shape[1]
    grid = (n_pad // tm, n_pad // tk)
    flops = 2 * n_pad * n_pad * h2_pad
    bytes_accessed = (a_bf.size * 2 + p2.size * 2 * grid[0] + s2.size * 4
                      + n_pad * h2_pad * 4)
    return pl.pallas_call(
        _agg_out_kernel,
        out_shape=jax.ShapeDtypeStruct((n_pad, h2_pad), jnp.float32),
        grid=grid,
        in_specs=[
            pl.BlockSpec((tm, tk), lambda m, k: (m, k)),
            pl.BlockSpec((tk, h2_pad), lambda m, k: (k, 0)),
            pl.BlockSpec((tm, h2_pad), lambda m, k: (m, 0)),
        ],
        out_specs=pl.BlockSpec((tm, h2_pad), lambda m, k: (m, 0)),
        scratch_shapes=[pltpu.VMEM((tm, h2_pad), jnp.float32)],
        compiler_params=pltpu.CompilerParams(
            dimension_semantics=("parallel", "arbitrary"),
            vmem_limit_bytes=_VMEM_LIMIT),
        cost_estimate=pl.CostEstimate(flops=flops, transcendentals=0,
                                      bytes_accessed=bytes_accessed),
    )(a_bf, p2, s2)


# ---------------------------------------------------------------------------
# Forward pass (matches SAGE: h = conv2(g, relu(conv1(g, x))))
# ---------------------------------------------------------------------------
@jax.jit
def sage_forward(adj_norm, x, params):
    n, f = x.shape
    h1 = params["w_self1"].shape[1]
    h2 = params["w_self2"].shape[1]

    n_pad, tm, tk = _choose_tiles(n)
    f_pad = _round_up(f, _LANE)
    h1_pad = _round_up(h1, _LANE)
    h2_pad = _round_up(h2, _LANE)

    # Zero-pad to lane-dense shapes; everything feeding the MXU is cast to
    # bf16 once in the wrapper (halves the dominant N^2 HBM stream and the X
    # stream; accumulation stays f32).
    a_bf = _pad2(adj_norm, n_pad, n_pad).astype(jnp.bfloat16)
    x_bf = _pad2(x, n_pad, f_pad).astype(jnp.bfloat16)

    # Fused [W_neigh | W_self] weights: each half is lane-padded to a multiple
    # of 128 so the in-kernel split is a layout-free lane-aligned slice.
    w1 = jnp.concatenate(
        [_pad2(params["w_neigh1"], f_pad, h1_pad),
         _pad2(params["w_self1"], f_pad, h1_pad)], axis=1).astype(jnp.bfloat16)
    b1 = _pad2(params["b1"][None, :], 1, h1_pad)
    w2 = jnp.concatenate(
        [_pad2(params["w_neigh2"], h1_pad, h2_pad),
         _pad2(params["w_self2"], h1_pad, h2_pad)], axis=1).astype(jnp.bfloat16)
    b2 = _pad2(params["b2"][None, :], 1, h2_pad)

    p1, s1 = _project(x_bf, w1, b1, tm)
    p2, s2 = _aggregate_relu_project(a_bf, p1, s1, w2, b2, tm, tk)
    out = _aggregate_add(a_bf, p2, s2, tm, tk)
    return out[:n, :h2]


# ---------------------------------------------------------------------------
# Params / graph construction (deterministic)
# ---------------------------------------------------------------------------
def make_params(key, in_feats, hid_feats, out_feats):
    ks = jax.random.split(key, 6)
    scale1 = 1.0 / jnp.sqrt(in_feats)
    scale2 = 1.0 / jnp.sqrt(hid_feats)
    return {
        "w_self1": jax.random.normal(ks[0], (in_feats, hid_feats), jnp.float32) * scale1,
        "w_neigh1": jax.random.normal(ks[1], (in_feats, hid_feats), jnp.float32) * scale1,
        "b1": jnp.zeros((hid_feats,), jnp.float32),
        "w_self2": jax.random.normal(ks[2], (hid_feats, out_feats), jnp.float32) * scale2,
        "w_neigh2": jax.random.normal(ks[3], (hid_feats, out_feats), jnp.float32) * scale2,
        "b2": jnp.zeros((out_feats,), jnp.float32),
    }


def build_graph(key, num_nodes, edge_prob=0.3):
    """Random directed graph -> row-normalized dense adjacency.

    adj[i, j] = 1 means edge j -> i.  Rows are divided by max(in_degree, 1) so
    adj @ X is the mean of in-neighbor features (zero for isolated nodes),
    matching DGL's 'mean' aggregator.
    """
    a = (jax.random.uniform(key, (num_nodes, num_nodes)) < edge_prob).astype(jnp.float32)
    a = a * (1.0 - jnp.eye(num_nodes, dtype=jnp.float32))  # no self-loops
    deg = jnp.sum(a, axis=1, keepdims=True)
    return a / jnp.maximum(deg, 1.0)


if __name__ == "__main__":
    num_nodes, in_feats, hid_feats, out_feats = 16, 32, 32, 16

    key = jax.random.PRNGKey(0)
    k_graph, k_feat, k_param = jax.random.split(key, 3)

    adj_norm = build_graph(k_graph, num_nodes)
    x = jax.random.normal(k_feat, (num_nodes, in_feats), jnp.float32)
    params = make_params(k_param, in_feats, hid_feats, out_feats)

    out = jax.block_until_ready(sage_forward(adj_norm, x, params))
    assert out.shape == (num_nodes, out_feats)

    # f32 reference (loose tolerance: MXU inputs are bf16 with f32 accumulation).
    def ref_layer(h, ws, wn, b):
        return h @ ws + (adj_norm @ h) @ wn + b
    h_ref = jax.nn.relu(ref_layer(x, params["w_self1"], params["w_neigh1"], params["b1"]))
    ref = ref_layer(h_ref, params["w_self2"], params["w_neigh2"], params["b2"])
    np.testing.assert_allclose(np.asarray(out), np.asarray(ref), rtol=5e-2, atol=5e-2)

    print("KERNEL_OK")
</pallas_src>

<mosaic_0001>
module attributes {stable_mosaic.version = 11 : i64} {
  func.func @_agg_proj_kernel(%arg0: i32, %arg1: i32, %arg2: memref<128x128xbf16, #tpu.memory_space<vmem>>, %arg3: memref<128x128xbf16, #tpu.memory_space<vmem>>, %arg4: memref<128x128xf32, #tpu.memory_space<vmem>>, %arg5: memref<128x256xbf16, #tpu.memory_space<vmem>>, %arg6: memref<1x128xf32, #tpu.memory_space<vmem>>, %arg7: memref<128x128xbf16, #tpu.memory_space<vmem>>, %arg8: memref<128x128xf32, #tpu.memory_space<vmem>>, %arg9: memref<128x128xf32, #tpu.memory_space<vmem>>) attributes {dimension_semantics = [#tpu.dimension_semantics<parallel>, #tpu.dimension_semantics<arbitrary>], iteration_bounds = array<i64: 1, 1>, scalar_prefetch = 0 : i64, scratch_operands = 1 : i64, tpu.core_type = #tpu.core_type<tc>, window_params = [{transform_indices = @transform_0, window_bounds = array<i64: 128, 128>}, {transform_indices = @transform_1, window_bounds = array<i64: 128, 128>}, {transform_indices = @transform_2, window_bounds = array<i64: 128, 128>}, {pipeline_mode = #tpu.pipeline_mode<synchronous>, transform_indices = @transform_3, window_bounds = array<i64: 128, 256>}, {pipeline_mode = #tpu.pipeline_mode<synchronous>, transform_indices = @transform_4, window_bounds = array<i64: 1, 128>}, {transform_indices = @transform_5, window_bounds = array<i64: 128, 128>}, {transform_indices = @transform_6, window_bounds = array<i64: 128, 128>}]} {
    %c0_i32 = arith.constant 0 : i32
    %0 = arith.cmpi eq, %arg1, %c0_i32 : i32
    %1 = arith.extui %0 : i1 to i32
    %c0_i32_0 = arith.constant 0 : i32
    %2 = arith.cmpi ne, %1, %c0_i32_0 : i32
    scf.if %2 {
      %cst_10 = arith.constant 0.000000e+00 : f32
      %12 = vector.broadcast %cst_10 : f32 to vector<128x128xf32>
      %c0_11 = arith.constant 0 : index
      %c0_12 = arith.constant 0 : index
      %13 = vector.load %arg9[%c0_11, %c0_12] : memref<128x128xf32, #tpu.memory_space<vmem>>, vector<128x128xf32>
      tpu.vector_store %arg9[%c0_11, %c0_12], %12 {strides = array<i32>} : memref<128x128xf32, #tpu.memory_space<vmem>>, vector<128x128xf32>,
    } else {
    }
    %c0 = arith.constant 0 : index
    %c0_1 = arith.constant 0 : index
    %3 = vector.load %arg9[%c0, %c0_1] : memref<128x128xf32, #tpu.memory_space<vmem>>, vector<128x128xf32>
    %c0_2 = arith.constant 0 : index
    %c0_3 = arith.constant 0 : index
    %4 = vector.load %arg2[%c0_2, %c0_3] : memref<128x128xbf16, #tpu.memory_space<vmem>>, vector<128x128xbf16>
    %c0_4 = arith.constant 0 : index
    %c0_5 = arith.constant 0 : index
    %5 = vector.load %arg3[%c0_4, %c0_5] : memref<128x128xbf16, #tpu.memory_space<vmem>>, vector<128x128xbf16>
    %cst = arith.constant dense<0.000000e+00> : vector<128x128xf32>
    %6 = tpu.matmul %4, %5, %cst {dimension_numbers = #tpu.dot_dimension_numbers<[1], [0], [0], [1], [0, 0, 1, 1], [], []>} : vector<128x128xbf16>, vector<128x128xbf16>, vector<128x128xf32> -> vector<128x128xf32>
    %7 = arith.addf %3, %6 : vector<128x128xf32>
    %c0_6 = arith.constant 0 : index
    %c0_7 = arith.constant 0 : index
    %8 = vector.load %arg9[%c0_6, %c0_7] : memref<128x128xf32, #tpu.memory_space<vmem>>, vector<128x128xf32>
    tpu.vector_store %arg9[%c0_6, %c0_7], %7 {strides = array<i32>} : memref<128x128xf32, #tpu.memory_space<vmem>>, vector<128x128xf32>,
    %c0_i32_8 = arith.constant 0 : i32
    %9 = arith.cmpi eq, %arg1, %c0_i32_8 : i32
    %10 = arith.extui %9 : i1 to i32
    %c0_i32_9 = arith.constant 0 : i32
    %11 = arith.cmpi ne, %10, %c0_i32_9 : i32
    scf.if %11 {
      %c0_10 = arith.constant 0 : index
      %c0_11 = arith.constant 0 : index
      %12 = vector.load %arg9[%c0_10, %c0_11] : memref<128x128xf32, #tpu.memory_space<vmem>>, vector<128x128xf32>
      %c0_12 = arith.constant 0 : index
      %c0_13 = arith.constant 0 : index
      %13 = vector.load %arg4[%c0_12, %c0_13] : memref<128x128xf32, #tpu.memory_space<vmem>>, vector<128x128xf32>
      %14 = arith.addf %12, %13 : vector<128x128xf32>
      %cst_14 = arith.constant 0.000000e+00 : f32
      %15 = vector.broadcast %cst_14 : f32 to vector<128x128xf32>
      %16 = arith.maximumf %14, %15 : vector<128x128xf32>
      %17 = arith.truncf %16 : vector<128x128xf32> to vector<128x128xbf16>
      %c0_15 = arith.constant 0 : index
      %c0_16 = arith.constant 0 : index
      %18 = vector.load %arg5[%c0_15, %c0_16] : memref<128x256xbf16, #tpu.memory_space<vmem>>, vector<128x256xbf16>
      %cst_17 = arith.constant dense<0.000000e+00> : vector<128x256xf32>
      %19 = tpu.matmul %17, %18, %cst_17 {dimension_numbers = #tpu.dot_dimension_numbers<[1], [0], [0], [1], [0, 0, 1, 1], [], []>} : vector<128x128xbf16>, vector<128x256xbf16>, vector<128x256xf32> -> vector<128x256xf32>
      %20 = vector.extract_strided_slice %19 {offsets = [0, 0], sizes = [128, 128], strides = [1, 1]} : vector<128x256xf32> to vector<128x128xf32>
      %21 = arith.truncf %20 : vector<128x128xf32> to vector<128x128xbf16>
      %c0_18 = arith.constant 0 : index
      %c0_19 = arith.constant 0 : index
      %22 = vector.load %arg7[%c0_18, %c0_19] : memref<128x128xbf16, #tpu.memory_space<vmem>>, vector<128x128xbf16>
      tpu.vector_store %arg7[%c0_18, %c0_19], %21 {strides = array<i32>} : memref<128x128xbf16, #tpu.memory_space<vmem>>, vector<128x128xbf16>,
      %23 = vector.extract_strided_slice %19 {offsets = [0, 128], sizes = [128, 128], strides = [1, 1]} : vector<128x256xf32> to vector<128x128xf32>
      %c0_20 = arith.constant 0 : index
      %c0_21 = arith.constant 0 : index
      %24 = vector.load %arg6[%c0_20, %c0_21] : memref<1x128xf32, #tpu.memory_space<vmem>>, vector<1x128xf32>
      %25 = vector.broadcast %24 : vector<1x128xf32> to vector<128x128xf32>
      %26 = arith.addf %23, %25 : vector<128x128xf32>
      %c0_22 = arith.constant 0 : index
      %c0_23 = arith.constant 0 : index
      %27 = vector.load %arg8[%c0_22, %c0_23] : memref<128x128xf32, #tpu.memory_space<vmem>>, vector<128x128xf32>
      tpu.vector_store %arg8[%c0_22, %c0_23], %26 {strides = array<i32>} : memref<128x128xf32, #tpu.memory_space<vmem>>, vector<128x128xf32>,
    } else {
    }
    return
  }
  func.func @transform_0(%arg0: i32, %arg1: i32) -> (i32, i32) {
    %c0_i32 = arith.constant 0 : i32
    return %arg0, %arg1 : i32, i32
  }
  func.func @transform_1(%arg0: i32, %arg1: i32) -> (i32, i32) {
    %c0_i32 = arith.constant 0 : i32
    %c0_i32_0 = arith.constant 0 : i32
    return %arg1, %c0_i32 : i32, i32
  }
  func.func @transform_2(%arg0: i32, %arg1: i32) -> (i32, i32) {
    %c0_i32 = arith.constant 0 : i32
    %c0_i32_0 = arith.constant 0 : i32
    return %arg0, %c0_i32 : i32, i32
  }
  func.func @transform_3(%arg0: i32, %arg1: i32) -> (i32, i32) {
    %c0_i32 = arith.constant 0 : i32
    %c0_i32_0 = arith.constant 0 : i32
    %c0_i32_1 = arith.constant 0 : i32
    return %c0_i32, %c0_i32_0 : i32, i32
  }
  func.func @transform_4(%arg0: i32, %arg1: i32) -> (i32, i32) {
    %c0_i32 = arith.constant 0 : i32
    %c0_i32_0 = arith.constant 0 : i32
    %c0_i32_1 = arith.constant 0 : i32
    return %c0_i32, %c0_i32_0 : i32, i32
  }
  func.func @transform_5(%arg0: i32, %arg1: i32) -> (i32, i32) {
    %c0_i32 = arith.constant 0 : i32
    %c0_i32_0 = arith.constant 0 : i32
    return %arg0, %c0_i32 : i32, i32
  }
  func.func @transform_6(%arg0: i32, %arg1: i32) -> (i32, i32) {
    %c0_i32 = arith.constant 0 : i32
    %c0_i32_0 = arith.constant 0 : i32
    return %arg0, %c0_i32 : i32, i32
  }
}

module attributes {stable_mosaic.version = 11 : i64} {
  func.func @_proj_kernel(%arg0: i32, %arg1: memref<128x128xbf16, #tpu.memory_space<vmem>>, %arg2: memref<128x256xbf16, #tpu.memory_space<vmem>>, %arg3: memref<1x128xf32, #tpu.memory_space<vmem>>, %arg4: memref<128x128xbf16, #tpu.memory_space<vmem>>, %arg5: memref<128x128xf32, #tpu.memory_space<vmem>>) attributes {dimension_semantics = [#tpu.dimension_semantics<parallel>], iteration_bounds = array<i64: 1>, scalar_prefetch = 0 : i64, scratch_operands = 0 : i64, tpu.core_type = #tpu.core_type<tc>, window_params = [{transform_indices = @transform_0, window_bounds = array<i64: 128, 128>}, {pipeline_mode = #tpu.pipeline_mode<synchronous>, transform_indices = @transform_1, window_bounds = array<i64: 128, 256>}, {pipeline_mode = #tpu.pipeline_mode<synchronous>, transform_indices = @transform_2, window_bounds = array<i64: 1, 128>}, {transform_indices = @transform_3, window_bounds = array<i64: 128, 128>}, {transform_indices = @transform_4, window_bounds = array<i64: 128, 128>}]} {
    %c0 = arith.constant 0 : index
    %c0_0 = arith.constant 0 : index
    %0 = vector.load %arg1[%c0, %c0_0] : memref<128x128xbf16, #tpu.memory_space<vmem>>, vector<128x128xbf16>
    %c0_1 = arith.constant 0 : index
    %c0_2 = arith.constant 0 : index
    %1 = vector.load %arg2[%c0_1, %c0_2] : memref<128x256xbf16, #tpu.memory_space<vmem>>, vector<128x256xbf16>
    %cst = arith.constant dense<0.000000e+00> : vector<128x256xf32>
    %2 = tpu.matmul %0, %1, %cst {dimension_numbers = #tpu.dot_dimension_numbers<[1], [0], [0], [1], [0, 0, 1, 1], [], []>} : vector<128x128xbf16>, vector<128x256xbf16>, vector<128x256xf32> -> vector<128x256xf32>
    %3 = vector.extract_strided_slice %2 {offsets = [0, 0], sizes = [128, 128], strides = [1, 1]} : vector<128x256xf32> to vector<128x128xf32>
    %4 = arith.truncf %3 : vector<128x128xf32> to vector<128x128xbf16>
    %c0_3 = arith.constant 0 : index
    %c0_4 = arith.constant 0 : index
    %5 = vector.load %arg4[%c0_3, %c0_4] : memref<128x128xbf16, #tpu.memory_space<vmem>>, vector<128x128xbf16>
    tpu.vector_store %arg4[%c0_3, %c0_4], %4 {strides = array<i32>} : memref<128x128xbf16, #tpu.memory_space<vmem>>, vector<128x128xbf16>,
    %6 = vector.extract_strided_slice %2 {offsets = [0, 128], sizes = [128, 128], strides = [1, 1]} : vector<128x256xf32> to vector<128x128xf32>
    %c0_5 = arith.constant 0 : index
    %c0_6 = arith.constant 0 : index
    %7 = vector.load %arg3[%c0_5, %c0_6] : memref<1x128xf32, #tpu.memory_space<vmem>>, vector<1x128xf32>
    %8 = vector.broadcast %7 : vector<1x128xf32> to vector<128x128xf32>
    %9 = arith.addf %6, %8 : vector<128x128xf32>
    %c0_7 = arith.constant 0 : index
    %c0_8 = arith.constant 0 : index
    %10 = vector.load %arg5[%c0_7, %c0_8] : memref<128x128xf32, #tpu.memory_space<vmem>>, vector<128x128xf32>
    tpu.vector_store %arg5[%c0_7, %c0_8], %9 {strides = array<i32>} : memref<128x128xf32, #tpu.memory_space<vmem>>, vector<128x128xf32>,
    return
  }
  func.func @transform_0(%arg0: i32) -> (i32, i32) {
    %c0_i32 = arith.constant 0 : i32
    %c0_i32_0 = arith.constant 0 : i32
    return %arg0, %c0_i32 : i32, i32
  }
  func.func @transform_1(%arg0: i32) -> (i32, i32) {
    %c0_i32 = arith.constant 0 : i32
    %c0_i32_0 = arith.constant 0 : i32
    %c0_i32_1 = arith.constant 0 : i32
    return %c0_i32, %c0_i32_0 : i32, i32
  }
  func.func @transform_2(%arg0: i32) -> (i32, i32) {
    %c0_i32 = arith.constant 0 : i32
    %c0_i32_0 = arith.constant 0 : i32
    %c0_i32_1 = arith.constant 0 : i32
    return %c0_i32, %c0_i32_0 : i32, i32
  }
  func.func @transform_3(%arg0: i32) -> (i32, i32) {
    %c0_i32 = arith.constant 0 : i32
    %c0_i32_0 = arith.constant 0 : i32
    return %arg0, %c0_i32 : i32, i32
  }
  func.func @transform_4(%arg0: i32) -> (i32, i32) {
    %c0_i32 = arith.constant 0 : i32
    %c0_i32_0 = arith.constant 0 : i32
    return %arg0, %c0_i32 : i32, i32
  }
}

module attributes {stable_mosaic.version = 11 : i64} {
  func.func @_agg_out_kernel(%arg0: i32, %arg1: i32, %arg2: memref<128x128xbf16, #tpu.memory_space<vmem>>, %arg3: memref<128x128xbf16, #tpu.memory_space<vmem>>, %arg4: memref<128x128xf32, #tpu.memory_space<vmem>>, %arg5: memref<128x128xf32, #tpu.memory_space<vmem>>, %arg6: memref<128x128xf32, #tpu.memory_space<vmem>>) attributes {dimension_semantics = [#tpu.dimension_semantics<parallel>, #tpu.dimension_semantics<arbitrary>], iteration_bounds = array<i64: 1, 1>, scalar_prefetch = 0 : i64, scratch_operands = 1 : i64, tpu.core_type = #tpu.core_type<tc>, window_params = [{transform_indices = @transform_0, window_bounds = array<i64: 128, 128>}, {transform_indices = @transform_1, window_bounds = array<i64: 128, 128>}, {transform_indices = @transform_2, window_bounds = array<i64: 128, 128>}, {transform_indices = @transform_3, window_bounds = array<i64: 128, 128>}]} {
    %c0_i32 = arith.constant 0 : i32
    %0 = arith.cmpi eq, %arg1, %c0_i32 : i32
    %1 = arith.extui %0 : i1 to i32
    %c0_i32_0 = arith.constant 0 : i32
    %2 = arith.cmpi ne, %1, %c0_i32_0 : i32
    scf.if %2 {
      %cst_10 = arith.constant 0.000000e+00 : f32
      %12 = vector.broadcast %cst_10 : f32 to vector<128x128xf32>
      %c0_11 = arith.constant 0 : index
      %c0_12 = arith.constant 0 : index
      %13 = vector.load %arg6[%c0_11, %c0_12] : memref<128x128xf32, #tpu.memory_space<vmem>>, vector<128x128xf32>
      tpu.vector_store %arg6[%c0_11, %c0_12], %12 {strides = array<i32>} : memref<128x128xf32, #tpu.memory_space<vmem>>, vector<128x128xf32>,
    } else {
    }
    %c0 = arith.constant 0 : index
    %c0_1 = arith.constant 0 : index
    %3 = vector.load %arg6[%c0, %c0_1] : memref<128x128xf32, #tpu.memory_space<vmem>>, vector<128x128xf32>
    %c0_2 = arith.constant 0 : index
    %c0_3 = arith.constant 0 : index
    %4 = vector.load %arg2[%c0_2, %c0_3] : memref<128x128xbf16, #tpu.memory_space<vmem>>, vector<128x128xbf16>
    %c0_4 = arith.constant 0 : index
    %c0_5 = arith.constant 0 : index
    %5 = vector.load %arg3[%c0_4, %c0_5] : memref<128x128xbf16, #tpu.memory_space<vmem>>, vector<128x128xbf16>
    %cst = arith.constant dense<0.000000e+00> : vector<128x128xf32>
    %6 = tpu.matmul %4, %5, %cst {dimension_numbers = #tpu.dot_dimension_numbers<[1], [0], [0], [1], [0, 0, 1, 1], [], []>} : vector<128x128xbf16>, vector<128x128xbf16>, vector<128x128xf32> -> vector<128x128xf32>
    %7 = arith.addf %3, %6 : vector<128x128xf32>
    %c0_6 = arith.constant 0 : index
    %c0_7 = arith.constant 0 : index
    %8 = vector.load %arg6[%c0_6, %c0_7] : memref<128x128xf32, #tpu.memory_space<vmem>>, vector<128x128xf32>
    tpu.vector_store %arg6[%c0_6, %c0_7], %7 {strides = array<i32>} : memref<128x128xf32, #tpu.memory_space<vmem>>, vector<128x128xf32>,
    %c0_i32_8 = arith.constant 0 : i32
    %9 = arith.cmpi eq, %arg1, %c0_i32_8 : i32
    %10 = arith.extui %9 : i1 to i32
    %c0_i32_9 = arith.constant 0 : i32
    %11 = arith.cmpi ne, %10, %c0_i32_9 : i32
    scf.if %11 {
      %c0_10 = arith.constant 0 : index
      %c0_11 = arith.constant 0 : index
      %12 = vector.load %arg6[%c0_10, %c0_11] : memref<128x128xf32, #tpu.memory_space<vmem>>, vector<128x128xf32>
      %c0_12 = arith.constant 0 : index
      %c0_13 = arith.constant 0 : index
      %13 = vector.load %arg4[%c0_12, %c0_13] : memref<128x128xf32, #tpu.memory_space<vmem>>, vector<128x128xf32>
      %14 = arith.addf %12, %13 : vector<128x128xf32>
      %c0_14 = arith.constant 0 : index
      %c0_15 = arith.constant 0 : index
      %15 = vector.load %arg5[%c0_14, %c0_15] : memref<128x128xf32, #tpu.memory_space<vmem>>, vector<128x128xf32>
      tpu.vector_store %arg5[%c0_14, %c0_15], %14 {strides = array<i32>} : memref<128x128xf32, #tpu.memory_space<vmem>>, vector<128x128xf32>,
    } else {
    }
    return
  }
  func.func @transform_0(%arg0: i32, %arg1: i32) -> (i32, i32) {
    %c0_i32 = arith.constant 0 : i32
    return %arg0, %arg1 : i32, i32
  }
  func.func @transform_1(%arg0: i32, %arg1: i32) -> (i32, i32) {
    %c0_i32 = arith.constant 0 : i32
    %c0_i32_0 = arith.constant 0 : i32
    return %arg1, %c0_i32 : i32, i32
  }
  func.func @transform_2(%arg0: i32, %arg1: i32) -> (i32, i32) {
    %c0_i32 = arith.constant 0 : i32
    %c0_i32_0 = arith.constant 0 : i32
    return %arg0, %c0_i32 : i32, i32
  }
  func.func @transform_3(%arg0: i32, %arg1: i32) -> (i32, i32) {
    %c0_i32 = arith.constant 0 : i32
    %c0_i32_0 = arith.constant 0 : i32
    return %arg0, %c0_i32 : i32, i32
  }
}

</mosaic_0001>

<bundles_post_ra>
// kernel: sage_forward.3
= control target key start
LH: loop header
LB: loop body
LE: loop exit
PB: predicated region body
PF: predicated region fallthrough
CT: control target
= control target key end

     0   :  { %v570_v1 = vmov 0   ;;  %s769_s1 = inlined_call_operand.vmem [shape: bf16[128,256], index: 1, kind: input, shape index: {}]   ;;  %s770_s0 = inlined_call_operand.vmem [shape: bf16[128,128], index: 0, kind: input, shape index: {}]   ;;  %s771_s2 = inlined_call_operand.vmem [shape: f32[1,128], index: 2, kind: input, shape index: {}]   ;;  %s772_s4 = inlined_call_operand.vmem [shape: f32[128,128], index: 4, kind: output, shape index: {1}]   ;;  %s773_s3 = inlined_call_operand.vmem [shape: bf16[128,128], index: 3, kind: output, shape index: {0}]  }
   0x1   :  { %v538_v0 = vld [vmem:[%s769_s1 + $0x4] ss:$8 sps:$4 sm:$0xff]   ;;  %209 = vmatprep.mubr.bf16.mxu0 %v570_v1  ;;  %249 = vmatprep.mubr.bf16.mxu1 %v570_v1  ;;  %v540_v2 = vld [vmem:[%s769_s1] ss:$8 sps:$4 sm:$0xff]   ;;  %v541_v3 = vld [vmem:[%s769_s1 + $0x14] ss:$8 sps:$4 sm:$0xff]  }
   0x2   :  { %177 = vmatprep.subr.bf16.mxu0 %v538_v0  ;;  %521 = vmatprep.subr.bf16.mxu1 %v538_v0  ;;  %v543_v4 = vld [vmem:[%s769_s1 + $0x10] ss:$8 sps:$4 sm:$0xff]   ;;  %v544_v5 = vld [vmem:[%s769_s1 + $0x24] ss:$8 sps:$4 sm:$0xff]   ;;  %v546_v6 = vld [vmem:[%s769_s1 + $0x20] ss:$8 sps:$4 sm:$0xff]  }
   0x3   :  { %178 = vmatpush1.bf16.msra.mxu0 %v540_v2  ;;  %529 = vmatpush1.bf16.msra.mxu1 %v540_v2  ;;  %v547_v7 = vld [vmem:[%s769_s1 + $0x34] ss:$8 sps:$4 sm:$0xff]   ;;  %v549_v8 = vld [vmem:[%s769_s1 + $0x30] ss:$8 sps:$4 sm:$0xff]   ;;  %v550_v9 = vld [vmem:[%s769_s1 + $0x44] ss:$8 sps:$4 sm:$0xff]  }
   0x4   :  { %179 = vmatprep.subr.bf16.mxu0 %v541_v3  ;;  %522 = vmatprep.subr.bf16.mxu1 %v541_v3  ;;  %v552_v10 = vld [vmem:[%s769_s1 + $0x40] ss:$8 sps:$4 sm:$0xff]   ;;  %v553_v11 = vld [vmem:[%s769_s1 + $0x54] ss:$8 sps:$4 sm:$0xff]   ;;  %v555_v12 = vld [vmem:[%s769_s1 + $0x50] ss:$8 sps:$4 sm:$0xff]  }
   0x5   :  { %v556_v13 = vld [vmem:[%s769_s1 + $0x64] ss:$8 sps:$4 sm:$0xff]   ;;  %v558_v14 = vld [vmem:[%s769_s1 + $0x60] ss:$8 sps:$4 sm:$0xff]   ;;  %v559_v15 = vld [vmem:[%s769_s1 + $0x74] ss:$8 sps:$4 sm:$0xff]  }
   0x6   :  { %v561_v16 = vld [vmem:[%s769_s1 + $0x70] ss:$8 sps:$4 sm:$0xff]   ;;  %v562_v17 = vld [vmem:[%s770_s0] sm:$0xff]   ;;  %v564_v19 = vld [vmem:[%s770_s0 + $0x8] sm:$0xff]  }
   0x7   :  { %180 = vmatpush1.bf16.msra.mxu0 %v543_v4  ;;  %530 = vmatpush1.bf16.msra.mxu1 %v543_v4  ;;  %v563_v18 = vld [vmem:[%s770_s0 + $0x20] sm:$0xff]   ;;  %v565_v20 = vld [vmem:[%s770_s0 + $0x28] sm:$0xff]   ;;  %v566_v21 = vld [vmem:[%s770_s0 + $0x10] sm:$0xff]  }
   0x8   :  { %181 = vmatprep.subr.bf16.mxu0 %v544_v5  ;;  %523 = vmatprep.subr.bf16.mxu1 %v544_v5  ;;  %v567_v22 = vld [vmem:[%s770_s0 + $0x30] sm:$0xff]   ;;  %v568_v23 = vld [vmem:[%s770_s0 + $0x18] sm:$0xff]   ;;  %v679_v25 = vld [vmem:[%s771_s2] ss:$0 sm:$0xff] }
   0x9   :  { %v569_v24 = vld [vmem:[%s770_s0 + $0x38] sm:$0xff]  }
   0xb   :  { %182 = vmatpush1.bf16.msra.mxu0 %v546_v6  ;;  %531 = vmatpush1.bf16.msra.mxu1 %v546_v6 }
   0xc   :  { %183 = vmatprep.subr.bf16.mxu0 %v547_v7  ;;  %524 = vmatprep.subr.bf16.mxu1 %v547_v7 }
   0xf   :  { %184 = vmatpush1.bf16.msra.mxu0 %v549_v8  ;;  %532 = vmatpush1.bf16.msra.mxu1 %v549_v8 }
  0x10   :  { %185 = vmatprep.subr.bf16.mxu0 %v550_v9  ;;  %525 = vmatprep.subr.bf16.mxu1 %v550_v9 }
  0x13   :  { %186 = vmatpush1.bf16.msra.mxu0 %v552_v10  ;;  %533 = vmatpush1.bf16.msra.mxu1 %v552_v10 }
  0x14   :  { %187 = vmatprep.subr.bf16.mxu0 %v553_v11  ;;  %526 = vmatprep.subr.bf16.mxu1 %v553_v11 }
  0x17   :  { %188 = vmatpush1.bf16.msra.mxu0 %v555_v12  ;;  %534 = vmatpush1.bf16.msra.mxu1 %v555_v12 }
  0x18   :  { %189 = vmatprep.subr.bf16.mxu0 %v556_v13  ;;  %527 = vmatprep.subr.bf16.mxu1 %v556_v13 }
  0x1b   :  { %190 = vmatpush1.bf16.msra.mxu0 %v558_v14  ;;  %535 = vmatpush1.bf16.msra.mxu1 %v558_v14 }
  0x1c   :  { %191 = vmatprep.subr.bf16.mxu0 %v559_v15  ;;  %528 = vmatprep.subr.bf16.mxu1 %v559_v15 }
  0x1f   :  { %192 = vmatpush1.bf16.msra.mxu0 %v561_v16  ;;  %536 = vmatpush1.bf16.msra.mxu1 %v561_v16 }
  0x22   :  { %210 = vmatmul.mubr.bf16.vlgmr.msra.gmra.mrb[0].mxu0 %v562_v17  ;;  %250 = vmatmul.mubr.bf16.vlgmr.msra.gmra.mrb[0].mxu1 %v563_v18 }
  0x23   :  { %219 = vmatprep.mubr.bf16.mxu0 %v570_v1  ;;  %259 = vmatprep.mubr.bf16.mxu1 %v570_v1 }
  0x2a   :  { %220 = vmatmul.mubr.bf16.gmra.mrb[4].mxu0 %v564_v19  ;;  %260 = vmatmul.mubr.bf16.gmra.mrb[4].mxu1 %v565_v20 }
  0x2b   :  { %229 = vmatprep.mubr.bf16.mxu0 %v570_v1  ;;  %269 = vmatprep.mubr.bf16.mxu1 %v570_v1 }
  0x32   :  { %230 = vmatmul.mubr.bf16.gmra.mrb[8].mxu0 %v566_v21  ;;  %270 = vmatmul.mubr.bf16.gmra.mrb[8].mxu1 %v567_v22 }
  0x33   :  { %239 = vmatprep.mubr.bf16.mxu0 %v570_v1  ;;  %279 = vmatprep.mubr.bf16.mxu1 %v570_v1 }
  0x3a   :  { %240 = vmatmul.mubr.bf16.gmra.mrb[12].mxu0 %v568_v23  ;;  %280 = vmatmul.mubr.bf16.gmra.mrb[12].mxu1 %v569_v24 }
  0xf5   :  { %v211_v26 = vpop.f32.mrb[0].mxu0  ;;  %v251_v27 = vpop.f32.mrb[0].mxu1 }
  0xf6   :  { %v213_v28 = vpop.f32.mrb[1].mxu0  ;;  %v253_v29 = vpop.f32.mrb[1].mxu1 }
  0xf7   :  { %v377_v30 = vadd.f32 %v679_v25, %v213_v28  ;;  %v385_v31 = vadd.f32 %v679_v25, %v253_v29  ;;  %v215_v32 = vpop.f32.mrb[2].mxu0  ;;  %v255_v33 = vpop.f32.mrb[2].mxu1 }
  0xf8   :  { %v477_v34 = vpack.c.bf16 %v215_v32, %v211_v26  ;;  %v497_v35 = vpack.c.bf16 %v255_v33, %v251_v27  ;;  %v217_v36 = vpop.f32.mrb[3].mxu0  ;;  %v257_v37 = vpop.f32.mrb[3].mxu1 }
  0xf9   :  { %393 = vst [vmem:[%s772_s4] sm:$0xff] %v377_v30  ;;  %401 = vst [vmem:[%s772_s4 + $0x40] sm:$0xff] %v385_v31  ;;  %v378_v38 = vadd.f32 %v679_v25, %v217_v36  ;;  %v386_v39 = vadd.f32 %v679_v25, %v257_v37 }
  0xfa   :  { %478 = vst [vmem:[%s773_s3] sm:$0xff] %v477_v34   ;;  %517 = vst [vmem:[%s773_s3 + $0x20] sm:$0xff] %v497_v35  }
  0xfb   :  { %394 = vst [vmem:[%s772_s4 + $0x8] sm:$0xff] %v378_v38  ;;  %402 = vst [vmem:[%s772_s4 + $0x48] sm:$0xff] %v386_v39 }
  0xfd   :  { %v221_v40 = vpop.f32.mrb[4].mxu0  ;;  %v261_v41 = vpop.f32.mrb[4].mxu1 }
  0xfe   :  { %v223_v42 = vpop.f32.mrb[5].mxu0  ;;  %v263_v43 = vpop.f32.mrb[5].mxu1 }
  0xff   :  { %v379_v44 = vadd.f32 %v679_v25, %v223_v42  ;;  %v387_v45 = vadd.f32 %v679_v25, %v263_v43  ;;  %v225_v46 = vpop.f32.mrb[6].mxu0  ;;  %v265_v47 = vpop.f32.mrb[6].mxu1 }
 0x100   :  { %v482_v48 = vpack.c.bf16 %v225_v46, %v221_v40  ;;  %v502_v49 = vpack.c.bf16 %v265_v47, %v261_v41  ;;  %v227_v50 = vpop.f32.mrb[7].mxu0  ;;  %v267_v51 = vpop.f32.mrb[7].mxu1 }
 0x101   :  { %395 = vst [vmem:[%s772_s4 + $0x10] sm:$0xff] %v379_v44  ;;  %403 = vst [vmem:[%s772_s4 + $0x50] sm:$0xff] %v387_v45  ;;  %v380_v52 = vadd.f32 %v679_v25, %v227_v50  ;;  %v388_v53 = vadd.f32 %v679_v25, %v267_v51 }
 0x102   :  { %514 = vst [vmem:[%s773_s3 + $0x8] sm:$0xff] %v482_v48   ;;  %518 = vst [vmem:[%s773_s3 + $0x28] sm:$0xff] %v502_v49  }
 0x103   :  { %396 = vst [vmem:[%s772_s4 + $0x18] sm:$0xff] %v380_v52  ;;  %404 = vst [vmem:[%s772_s4 + $0x58] sm:$0xff] %v388_v53 }
 0x105   :  { %v231_v54 = vpop.f32.mrb[8].mxu0  ;;  %v271_v55 = vpop.f32.mrb[8].mxu1 }
 0x106   :  { %v233_v56 = vpop.f32.mrb[9].mxu0  ;;  %v273_v57 = vpop.f32.mrb[9].mxu1 }
 0x107   :  { %v381_v58 = vadd.f32 %v679_v25, %v233_v56  ;;  %v389_v59 = vadd.f32 %v679_v25, %v273_v57  ;;  %v235_v60 = vpop.f32.mrb[10].mxu0  ;;  %v275_v61 = vpop.f32.mrb[10].mxu1 }
 0x108   :  { %v487_v62 = vpack.c.bf16 %v235_v60, %v231_v54  ;;  %v507_v63 = vpack.c.bf16 %v275_v61, %v271_v55  ;;  %v237_v0 = vpop.f32.mrb[11].mxu0  ;;  %v277_v1 = vpop.f32.mrb[11].mxu1 }
 0x109   :  { %397 = vst [vmem:[%s772_s4 + $0x20] sm:$0xff] %v381_v58  ;;  %405 = vst [vmem:[%s772_s4 + $0x60] sm:$0xff] %v389_v59  ;;  %v382_v2 = vadd.f32 %v679_v25, %v237_v0  ;;  %v390_v3 = vadd.f32 %v679_v25, %v277_v1 }
 0x10a   :  { %515 = vst [vmem:[%s773_s3 + $0x10] sm:$0xff] %v487_v62   ;;  %519 = vst [vmem:[%s773_s3 + $0x30] sm:$0xff] %v507_v63  }
 0x10b   :  { %398 = vst [vmem:[%s772_s4 + $0x28] sm:$0xff] %v382_v2  ;;  %406 = vst [vmem:[%s772_s4 + $0x68] sm:$0xff] %v390_v3 }
 0x10d   :  { %v241_v4 = vpop.f32.mrb[12].mxu0  ;;  %v281_v5 = vpop.f32.mrb[12].mxu1 }
 0x10e   :  { %v243_v6 = vpop.f32.mrb[13].mxu0  ;;  %v283_v7 = vpop.f32.mrb[13].mxu1 }
 0x10f   :  { %v383_v8 = vadd.f32 %v679_v25, %v243_v6  ;;  %v391_v9 = vadd.f32 %v679_v25, %v283_v7  ;;  %v245_v10 = vpop.f32.mrb[14].mxu0  ;;  %v285_v11 = vpop.f32.mrb[14].mxu1 }
 0x110   :  { %v492_v12 = vpack.c.bf16 %v245_v10, %v241_v4  ;;  %v512_v13 = vpack.c.bf16 %v285_v11, %v281_v5  ;;  %v247_v14 = vpop.f32.mrb[15].mxu0  ;;  %v287_v15 = vpop.f32.mrb[15].mxu1 }
 0x111   :  { %399 = vst [vmem:[%s772_s4 + $0x30] sm:$0xff] %v383_v8  ;;  %407 = vst [vmem:[%s772_s4 + $0x70] sm:$0xff] %v391_v9  ;;  %v384_v16 = vadd.f32 %v679_v25, %v247_v14  ;;  %v392_v17 = vadd.f32 %v679_v25, %v287_v15 }
 0x112   :  { %516 = vst [vmem:[%s773_s3 + $0x18] sm:$0xff] %v492_v12   ;;  %520 = vst [vmem:[%s773_s3 + $0x38] sm:$0xff] %v512_v13  }
 0x113   :  { %400 = vst [vmem:[%s772_s4 + $0x38] sm:$0xff] %v384_v16  ;;  %408 = vst [vmem:[%s772_s4 + $0x78] sm:$0xff] %v392_v17 }

// kernel: sage_forward.5
= control target key start
LH: loop header
LB: loop body
LE: loop exit
PB: predicated region body
PF: predicated region fallthrough
CT: control target
= control target key end

     0   :  { %s639_s1 = inlined_call_operand.vmem [shape: bf16[128,128], index: 1, kind: input, shape index: {}]   ;;  %s640_s0 = inlined_call_operand.vmem [shape: bf16[128,128], index: 0, kind: input, shape index: {}]   ;;  %s641_s2 = inlined_call_operand.vmem [shape: f32[128,128], index: 2, kind: input, shape index: {}]   ;;  %s642_s3 = inlined_call_operand.vmem [shape: f32[128,128], index: 3, kind: output, shape index: {}]  }
   0x1   :  { %v459_v0 = vld [vmem:[%s639_s1] sm:$0xff]   ;;  %v460_v1 = vld [vmem:[%s639_s1 + $0x8] sm:$0xff]   ;;  %v461_v2 = vld [vmem:[%s639_s1 + $0x10] sm:$0xff]  }
   0x2   :  { %411 = vmatprep.subr.bf16.mxu0 %v459_v0  ;;  %443 = vmatprep.subr.bf16.mxu1 %v459_v0  ;;  %v462_v3 = vld [vmem:[%s639_s1 + $0x18] sm:$0xff]   ;;  %v467_v4 = vld [vmem:[%s640_s0] sm:$0xff]   ;;  %v464_v7 = vld [vmem:[%s639_s1 + $0x28] sm:$0xff]  }
   0x3   :  { %412 = vmatpush3.bf16.msra.mxu0 %v459_v0  ;;  %451 = vmatpush3.bf16.msra.mxu1 %v459_v0  ;;  %v468_v5 = vld [vmem:[%s640_s0 + $0x20] sm:$0xff]   ;;  %v465_v8 = vld [vmem:[%s639_s1 + $0x30] sm:$0xff]   ;;  %v466_v9 = vld [vmem:[%s639_s1 + $0x38] sm:$0xff]  }
   0x4   :  { %413 = vmatprep.subr.bf16.mxu0 %v460_v1  ;;  %444 = vmatprep.subr.bf16.mxu1 %v460_v1  ;;  %v463_v6 = vld [vmem:[%s639_s1 + $0x20] sm:$0xff]   ;;  %v469_v10 = vld [vmem:[%s640_s0 + $0x8] sm:$0xff]   ;;  %v471_v12 = vld [vmem:[%s640_s0 + $0x10] sm:$0xff]  }
   0x5   :  { %427 = vmatprep.mubr.bf16.mxu0 %v467_v4  ;;  %435 = vmatprep.mubr.bf16.mxu1 %v468_v5  ;;  %v470_v11 = vld [vmem:[%s640_s0 + $0x28] sm:$0xff]   ;;  %v472_v13 = vld [vmem:[%s640_s0 + $0x30] sm:$0xff]   ;;  %v473_v14 = vld [vmem:[%s640_s0 + $0x18] sm:$0xff]  }
   0x6   :  { %v474_v15 = vld [vmem:[%s640_s0 + $0x38] sm:$0xff]   ;;  %v329_v16 = vld [vmem:[%s641_s2 + $0x10] sm:$0xff]  ;;  %v327_v18 = vld [vmem:[%s641_s2] sm:$0xff] }
   0x7   :  { %414 = vmatpush3.bf16.msra.mxu0 %v460_v1  ;;  %452 = vmatpush3.bf16.msra.mxu1 %v460_v1  ;;  %v337_v17 = vld [vmem:[%s641_s2 + $0x50] sm:$0xff]  ;;  %v335_v19 = vld [vmem:[%s641_s2 + $0x40] sm:$0xff]  ;;  %v330_v22 = vld [vmem:[%s641_s2 + $0x18] sm:$0xff] }
   0x8   :  { %415 = vmatprep.subr.bf16.mxu0 %v461_v2  ;;  %445 = vmatprep.subr.bf16.mxu1 %v461_v2  ;;  %v338_v23 = vld [vmem:[%s641_s2 + $0x58] sm:$0xff]  ;;  %v328_v28 = vld [vmem:[%s641_s2 + $0x8] sm:$0xff]  ;;  %v333_v40 = vld [vmem:[%s641_s2 + $0x30] sm:$0xff] }
   0x9   :  { %v336_v29 = vld [vmem:[%s641_s2 + $0x48] sm:$0xff]  ;;  %v341_v41 = vld [vmem:[%s641_s2 + $0x70] sm:$0xff]  ;;  %v331_v42 = vld [vmem:[%s641_s2 + $0x20] sm:$0xff] }
   0xa   :  { %v339_v43 = vld [vmem:[%s641_s2 + $0x60] sm:$0xff]  ;;  %v334_v46 = vld [vmem:[%s641_s2 + $0x38] sm:$0xff]  ;;  %v332_v52 = vld [vmem:[%s641_s2 + $0x28] sm:$0xff] }
   0xb   :  { %416 = vmatpush3.bf16.msra.mxu0 %v461_v2  ;;  %453 = vmatpush3.bf16.msra.mxu1 %v461_v2  ;;  %v342_v47 = vld [vmem:[%s641_s2 + $0x78] sm:$0xff]  ;;  %v340_v53 = vld [vmem:[%s641_s2 + $0x68] sm:$0xff] }
   0xc   :  { %417 = vmatprep.subr.bf16.mxu0 %v462_v3  ;;  %446 = vmatprep.subr.bf16.mxu1 %v462_v3 }
   0xf   :  { %418 = vmatpush3.bf16.msra.mxu0 %v462_v3  ;;  %454 = vmatpush3.bf16.msra.mxu1 %v462_v3 }
  0x10   :  { %419 = vmatprep.subr.bf16.mxu0 %v463_v6  ;;  %447 = vmatprep.subr.bf16.mxu1 %v463_v6 }
  0x13   :  { %420 = vmatpush3.bf16.msra.mxu0 %v463_v6  ;;  %455 = vmatpush3.bf16.msra.mxu1 %v463_v6 }
  0x14   :  { %421 = vmatprep.subr.bf16.mxu0 %v464_v7  ;;  %448 = vmatprep.subr.bf16.mxu1 %v464_v7 }
  0x17   :  { %422 = vmatpush3.bf16.msra.mxu0 %v464_v7  ;;  %456 = vmatpush3.bf16.msra.mxu1 %v464_v7 }
  0x18   :  { %423 = vmatprep.subr.bf16.mxu0 %v465_v8  ;;  %449 = vmatprep.subr.bf16.mxu1 %v465_v8 }
  0x1b   :  { %424 = vmatpush3.bf16.msra.mxu0 %v465_v8  ;;  %457 = vmatpush3.bf16.msra.mxu1 %v465_v8 }
  0x1c   :  { %425 = vmatprep.subr.bf16.mxu0 %v466_v9  ;;  %450 = vmatprep.subr.bf16.mxu1 %v466_v9 }
  0x1f   :  { %426 = vmatpush3.bf16.msra.mxu0 %v466_v9  ;;  %458 = vmatpush3.bf16.msra.mxu1 %v466_v9 }
  0x22   :  { %428 = vmatmul.mubr.bf16.vlgmr.msra.gmra.mrb[0].mxu0 %v469_v10  ;;  %436 = vmatmul.mubr.bf16.vlgmr.msra.gmra.mrb[0].mxu1 %v470_v11 }
  0x23   :  { %431 = vmatprep.mubr.bf16.mxu0 %v471_v12  ;;  %439 = vmatprep.mubr.bf16.mxu1 %v472_v13 }
  0x2a   :  { %432 = vmatmul.mubr.bf16.gmra.mrb[4].mxu0 %v473_v14  ;;  %440 = vmatmul.mubr.bf16.gmra.mrb[4].mxu1 %v474_v15 }
  0xf5   :  { %v429_v20 = vpop.f32.mrb[0].mxu0  ;;  %v437_v21 = vpop.f32.mrb[0].mxu1 }
  0xf6   :  { %v345_v24 = vadd.f32 %v429_v20, %v329_v16  ;;  %v353_v25 = vadd.f32 %v437_v21, %v337_v17  ;;  %v213_v26 = vpop.f32.mrb[1].mxu0  ;;  %v245_v27 = vpop.f32.mrb[1].mxu1 }
  0xf7   :  { %v343_v30 = vadd.f32 %v327_v18, %v213_v26  ;;  %v351_v31 = vadd.f32 %v335_v19, %v245_v27  ;;  %v430_v32 = vpop.f32.mrb[2].mxu0  ;;  %v438_v33 = vpop.f32.mrb[2].mxu1 }
  0xf8   :  { %361 = vst [vmem:[%s642_s3 + $0x10] sm:$0xff] %v345_v24  ;;  %369 = vst [vmem:[%s642_s3 + $0x50] sm:$0xff] %v353_v25  ;;  %v346_v34 = vadd.f32 %v430_v32, %v330_v22  ;;  %v354_v35 = vadd.f32 %v438_v33, %v338_v23  ;;  %v216_v36 = vpop.f32.mrb[3].mxu0  ;;  %v248_v37 = vpop.f32.mrb[3].mxu1 }
  0xf9   :  { %359 = vst [vmem:[%s642_s3] sm:$0xff] %v343_v30  ;;  %367 = vst [vmem:[%s642_s3 + $0x40] sm:$0xff] %v351_v31  ;;  %v344_v38 = vadd.f32 %v328_v28, %v216_v36  ;;  %v352_v39 = vadd.f32 %v336_v29, %v248_v37 }
  0xfa   :  { %362 = vst [vmem:[%s642_s3 + $0x18] sm:$0xff] %v346_v34  ;;  %370 = vst [vmem:[%s642_s3 + $0x58] sm:$0xff] %v354_v35 }
  0xfb   :  { %360 = vst [vmem:[%s642_s3 + $0x8] sm:$0xff] %v344_v38  ;;  %368 = vst [vmem:[%s642_s3 + $0x48] sm:$0xff] %v352_v39 }
  0xfd   :  { %v433_v44 = vpop.f32.mrb[4].mxu0  ;;  %v441_v45 = vpop.f32.mrb[4].mxu1 }
  0xfe   :  { %v349_v48 = vadd.f32 %v433_v44, %v333_v40  ;;  %v357_v49 = vadd.f32 %v441_v45, %v341_v41  ;;  %v229_v50 = vpop.f32.mrb[5].mxu0  ;;  %v261_v51 = vpop.f32.mrb[5].mxu1 }
  0xff   :  { %v347_v54 = vadd.f32 %v331_v42, %v229_v50  ;;  %v355_v55 = vadd.f32 %v339_v43, %v261_v51  ;;  %v434_v56 = vpop.f32.mrb[6].mxu0  ;;  %v442_v57 = vpop.f32.mrb[6].mxu1 }
 0x100   :  { %365 = vst [vmem:[%s642_s3 + $0x30] sm:$0xff] %v349_v48  ;;  %373 = vst [vmem:[%s642_s3 + $0x70] sm:$0xff] %v357_v49  ;;  %v350_v58 = vadd.f32 %v434_v56, %v334_v46  ;;  %v358_v59 = vadd.f32 %v442_v57, %v342_v47  ;;  %v232_v60 = vpop.f32.mrb[7].mxu0  ;;  %v264_v61 = vpop.f32.mrb[7].mxu1 }
 0x101   :  { %363 = vst [vmem:[%s642_s3 + $0x20] sm:$0xff] %v347_v54  ;;  %371 = vst [vmem:[%s642_s3 + $0x60] sm:$0xff] %v355_v55  ;;  %v348_v62 = vadd.f32 %v332_v52, %v232_v60  ;;  %v356_v63 = vadd.f32 %v340_v53, %v264_v61 }
 0x102   :  { %366 = vst [vmem:[%s642_s3 + $0x38] sm:$0xff] %v350_v58  ;;  %374 = vst [vmem:[%s642_s3 + $0x78] sm:$0xff] %v358_v59 }
 0x103   :  { %364 = vst [vmem:[%s642_s3 + $0x28] sm:$0xff] %v348_v62  ;;  %372 = vst [vmem:[%s642_s3 + $0x68] sm:$0xff] %v356_v63 }

// kernel: sage_forward.4
= control target key start
LH: loop header
LB: loop body
LE: loop exit
PB: predicated region body
PF: predicated region fallthrough
CT: control target
= control target key end

     0   :  { %v944_v32 = vmov 0   ;;  %s1225_s1 = inlined_call_operand.vmem [shape: bf16[128,128], index: 1, kind: input, shape index: {}]   ;;  %s1226_s0 = inlined_call_operand.vmem [shape: bf16[128,128], index: 0, kind: input, shape index: {}]   ;;  %s1227_s3 = inlined_call_operand.vmem [shape: bf16[128,256], index: 3, kind: input, shape index: {}]   ;;  %s1228_s2 = inlined_call_operand.vmem [shape: f32[128,128], index: 2, kind: input, shape index: {}]   ;;  %s1229_s4 = inlined_call_operand.vmem [shape: f32[1,128], index: 4, kind: input, shape index: {}]   ;;  %s1230_s6 = inlined_call_operand.vmem [shape: f32[128,128], index: 6, kind: output, shape index: {1}]   ;;  %s1231_s5 = inlined_call_operand.vmem [shape: bf16[128,128], index: 5, kind: output, shape index: {0}]  }
   0x1   :  { %v904_v0 = vld [vmem:[%s1225_s1] sm:$0xff]   ;;  %v905_v1 = vld [vmem:[%s1225_s1 + $0x8] sm:$0xff]   ;;  %v906_v2 = vld [vmem:[%s1225_s1 + $0x10] sm:$0xff]   ;;  %539 = vmatprep.mubr.bf16.mxu1 %v944_v32 }
   0x2   :  { %855 = vmatprep.subr.bf16.mxu0 %v904_v0  ;;  %v907_v3 = vld [vmem:[%s1225_s1 + $0x18] sm:$0xff]   ;;  %v912_v4 = vld [vmem:[%s1226_s0] sm:$0xff]   ;;  %v909_v6 = vld [vmem:[%s1225_s1 + $0x28] sm:$0xff]  }
   0x3   :  { %856 = vmatpush3.bf16.msra.mxu0 %v904_v0  ;;  %871 = vmatprep.mubr.bf16.mxu0 %v912_v4  ;;  %v908_v5 = vld [vmem:[%s1225_s1 + $0x20] sm:$0xff]   ;;  %v925_v9 = vld [vmem:[%s1227_s3 + $0x14] ss:$8 sps:$4 sm:$0xff]   ;;  %v923_v11 = vld [vmem:[%s1227_s3 + $0x10] ss:$8 sps:$4 sm:$0xff]  }
   0x4   :  { %857 = vmatprep.subr.bf16.mxu0 %v905_v1  ;;  %v922_v7 = vld [vmem:[%s1227_s3 + $0x4] ss:$8 sps:$4 sm:$0xff]   ;;  %v920_v8 = vld [vmem:[%s1227_s3] ss:$8 sps:$4 sm:$0xff]   ;;  %v910_v10 = vld [vmem:[%s1225_s1 + $0x30] sm:$0xff]  }
   0x5   :  { %887 = vmatprep.subr.bf16.mxu1 %v922_v7  ;;  %v911_v12 = vld [vmem:[%s1225_s1 + $0x38] sm:$0xff]   ;;  %v928_v13 = vld [vmem:[%s1227_s3 + $0x24] ss:$8 sps:$4 sm:$0xff]   ;;  %v926_v14 = vld [vmem:[%s1227_s3 + $0x20] ss:$8 sps:$4 sm:$0xff]  }
   0x6   :  { %895 = vmatpush1.bf16.msra.mxu1 %v920_v8  ;;  %v931_v15 = vld [vmem:[%s1227_s3 + $0x34] ss:$8 sps:$4 sm:$0xff]   ;;  %v913_v16 = vld [vmem:[%s1226_s0 + $0x8] sm:$0xff]   ;;  %v929_v17 = vld [vmem:[%s1227_s3 + $0x30] ss:$8 sps:$4 sm:$0xff]  }
   0x7   :  { %858 = vmatpush3.bf16.msra.mxu0 %v905_v1  ;;  %888 = vmatprep.subr.bf16.mxu1 %v925_v9  ;;  %v914_v18 = vld [vmem:[%s1226_s0 + $0x10] sm:$0xff]   ;;  %v934_v19 = vld [vmem:[%s1227_s3 + $0x44] ss:$8 sps:$4 sm:$0xff]   ;;  %v932_v20 = vld [vmem:[%s1227_s3 + $0x40] ss:$8 sps:$4 sm:$0xff]  }
   0x8   :  { %859 = vmatprep.subr.bf16.mxu0 %v906_v2  ;;  %v937_v21 = vld [vmem:[%s1227_s3 + $0x54] ss:$8 sps:$4 sm:$0xff]   ;;  %v935_v23 = vld [vmem:[%s1227_s3 + $0x50] ss:$8 sps:$4 sm:$0xff]   ;;  %v916_v24 = vld [vmem:[%s1226_s0 + $0x20] sm:$0xff]  }
   0x9   :  { %v915_v22 = vld [vmem:[%s1226_s0 + $0x18] sm:$0xff]   ;;  %v917_v25 = vld [vmem:[%s1226_s0 + $0x28] sm:$0xff]   ;;  %v918_v26 = vld [vmem:[%s1226_s0 + $0x30] sm:$0xff]  }
   0xa   :  { %896 = vmatpush1.bf16.msra.mxu1 %v923_v11  ;;  %v919_v27 = vld [vmem:[%s1226_s0 + $0x38] sm:$0xff]   ;;  %v940_v28 = vld [vmem:[%s1227_s3 + $0x64] ss:$8 sps:$4 sm:$0xff]   ;;  %v938_v29 = vld [vmem:[%s1227_s3 + $0x60] ss:$8 sps:$4 sm:$0xff]  }
   0xb   :  { %860 = vmatpush3.bf16.msra.mxu0 %v906_v2  ;;  %889 = vmatprep.subr.bf16.mxu1 %v928_v13  ;;  %v943_v30 = vld [vmem:[%s1227_s3 + $0x74] ss:$8 sps:$4 sm:$0xff]   ;;  %v941_v31 = vld [vmem:[%s1227_s3 + $0x70] ss:$8 sps:$4 sm:$0xff]   ;;  %v335_v34 = vld [vmem:[%s1228_s2] sm:$0xff] }
   0xc   :  { %861 = vmatprep.subr.bf16.mxu0 %v907_v3  ;;  %v337_v33 = vld [vmem:[%s1228_s2 + $0x10] sm:$0xff]  ;;  %v338_v36 = vld [vmem:[%s1228_s2 + $0x18] sm:$0xff]  ;;  %v336_v39 = vld [vmem:[%s1228_s2 + $0x8] sm:$0xff] }
   0xd   :  { %v341_v49 = vld [vmem:[%s1228_s2 + $0x30] sm:$0xff]  ;;  %v339_v51 = vld [vmem:[%s1228_s2 + $0x20] sm:$0xff]  ;;  %v342_v54 = vld [vmem:[%s1228_s2 + $0x38] sm:$0xff] }
   0xe   :  { %897 = vmatpush1.bf16.msra.mxu1 %v926_v14  ;;  %v340_v57 = vld [vmem:[%s1228_s2 + $0x28] sm:$0xff] }
   0xf   :  { %862 = vmatpush3.bf16.msra.mxu0 %v907_v3  ;;  %890 = vmatprep.subr.bf16.mxu1 %v931_v15  ;;  %v345_v3 = vld [vmem:[%s1228_s2 + $0x50] sm:$0xff] }
  0x10   :  { %863 = vmatprep.subr.bf16.mxu0 %v908_v5 }
  0x12   :  { %898 = vmatpush1.bf16.msra.mxu1 %v929_v17 }
  0x13   :  { %864 = vmatpush3.bf16.msra.mxu0 %v908_v5  ;;  %891 = vmatprep.subr.bf16.mxu1 %v934_v19  ;;  %v343_v5 = vld [vmem:[%s1228_s2 + $0x40] sm:$0xff] }
  0x14   :  { %865 = vmatprep.subr.bf16.mxu0 %v909_v6 }
  0x16   :  { %899 = vmatpush1.bf16.msra.mxu1 %v932_v20 }
  0x17   :  { %866 = vmatpush3.bf16.msra.mxu0 %v909_v6  ;;  %892 = vmatprep.subr.bf16.mxu1 %v937_v21 }
  0x18   :  { %867 = vmatprep.subr.bf16.mxu0 %v910_v10 }
  0x1a   :  { %900 = vmatpush1.bf16.msra.mxu1 %v935_v23 }
  0x1b   :  { %868 = vmatpush3.bf16.msra.mxu0 %v910_v10  ;;  %893 = vmatprep.subr.bf16.mxu1 %v940_v28 }
  0x1c   :  { %869 = vmatprep.subr.bf16.mxu0 %v911_v12 }
  0x1e   :  { %901 = vmatpush1.bf16.msra.mxu1 %v938_v29 }
  0x1f   :  { %870 = vmatpush3.bf16.msra.mxu0 %v911_v12  ;;  %894 = vmatprep.subr.bf16.mxu1 %v943_v30 }
  0x20   :  { %487 = vmatprep.subr.bf16.mxu0 %v922_v7 }
  0x22   :  { %872 = vmatmul.mubr.bf16.vlgmr.msra.gmra.mrb[0].mxu0 %v913_v16  ;;  %902 = vmatpush1.bf16.msra.mxu1 %v941_v31 }
  0x23   :  { %875 = vmatprep.mubr.bf16.mxu0 %v914_v18  ;;  %488 = vmatpush1.bf16.msra.mxu0 %v920_v8  ;;  %v346_v8 = vld [vmem:[%s1228_s2 + $0x58] sm:$0xff] }
  0x24   :  { %489 = vmatprep.subr.bf16.mxu0 %v925_v9 }
  0x27   :  { %490 = vmatpush1.bf16.msra.mxu0 %v923_v11  ;;  %v344_v11 = vld [vmem:[%s1228_s2 + $0x48] sm:$0xff] }
  0x28   :  { %491 = vmatprep.subr.bf16.mxu0 %v928_v13 }
  0x2a   :  { %876 = vmatmul.mubr.bf16.gmra.mrb[4].mxu0 %v915_v22 }
  0x2b   :  { %879 = vmatprep.mubr.bf16.mxu0 %v916_v24  ;;  %492 = vmatpush1.bf16.msra.mxu0 %v926_v14 }
  0x2c   :  { %493 = vmatprep.subr.bf16.mxu0 %v931_v15 }
  0x2f   :  { %494 = vmatpush1.bf16.msra.mxu0 %v929_v17 }
  0x30   :  { %495 = vmatprep.subr.bf16.mxu0 %v934_v19 }
  0x32   :  { %880 = vmatmul.mubr.bf16.gmra.mrb[8].mxu0 %v917_v25 }
  0x33   :  { %883 = vmatprep.mubr.bf16.mxu0 %v918_v26  ;;  %496 = vmatpush1.bf16.msra.mxu0 %v932_v20  ;;  %v350_v26 = vld [vmem:[%s1228_s2 + $0x78] sm:$0xff] }
  0x34   :  { %497 = vmatprep.subr.bf16.mxu0 %v937_v21  ;;  %v349_v21 = vld [vmem:[%s1228_s2 + $0x70] sm:$0xff] }
  0x37   :  { %498 = vmatpush1.bf16.msra.mxu0 %v935_v23  ;;  %v347_v23 = vld [vmem:[%s1228_s2 + $0x60] sm:$0xff] }
  0x38   :  { %499 = vmatprep.subr.bf16.mxu0 %v940_v28 }
  0x3a   :  { %884 = vmatmul.mubr.bf16.gmra.mrb[12].mxu0 %v919_v27 }
  0x3b   :  { %500 = vmatpush1.bf16.msra.mxu0 %v938_v29  ;;  %519 = vmatprep.mubr.bf16.mxu0 %v944_v32  ;;  %v348_v29 = vld [vmem:[%s1228_s2 + $0x68] sm:$0xff] }
  0x3c   :  { %501 = vmatprep.subr.bf16.mxu0 %v943_v30 }
  0x3f   :  { %502 = vmatpush1.bf16.msra.mxu0 %v941_v31 }
  0xf5   :  { %v873_v35 = vpop.f32.mrb[0].mxu0 }
  0xf6   :  { %v353_v37 = vadd.f32 %v873_v35, %v337_v33  ;;  %v221_v38 = vpop.f32.mrb[1].mxu0 }
  0xf7   :  { %v351_v40 = vadd.f32 %v335_v34, %v221_v38  ;;  %v874_v41 = vpop.f32.mrb[2].mxu0 }
  0xf8   :  { %v354_v42 = vadd.f32 %v874_v41, %v338_v36  ;;  %v224_v43 = vpop.f32.mrb[3].mxu0  ;;  %v369_v45 = vmax.f32 %v353_v37, 0.0 }
  0xf9   :  { %v352_v44 = vadd.f32 %v336_v39, %v224_v43  ;;  %v367_v47 = vmax.f32 %v351_v40, 0.0 }
  0xfa   :  { %v370_v46 = vmax.f32 %v354_v42, 0.0  ;;  %v1135_v42 = vld [vmem:[%s1229_s4] ss:$0 sm:$0xff] }
  0xfb   :  { %v368_v48 = vmax.f32 %v352_v44, 0.0 }
  0xfc   :  { %v384_v50 = vpack.c.bf16 %v370_v46, %v369_v45 }
  0xfd   :  { %v383_v52 = vpack.c.bf16 %v368_v48, %v367_v47  ;;  %v877_v53 = vpop.f32.mrb[4].mxu0 }
  0xfe   :  { %v357_v55 = vadd.f32 %v877_v53, %v341_v49  ;;  %v237_v56 = vpop.f32.mrb[5].mxu0 }
  0xff   :  { %v355_v58 = vadd.f32 %v339_v51, %v237_v56  ;;  %v878_v59 = vpop.f32.mrb[6].mxu0  ;;  %520 = vmatmul.mubr.bf16.vlgmr.msra.gmra.mrb[16].mxu0 %v383_v52 }
 0x100   :  { %v358_v60 = vadd.f32 %v878_v59, %v342_v54  ;;  %v240_v61 = vpop.f32.mrb[7].mxu0  ;;  %529 = vmatprep.mubr.bf16.mxu0 %v944_v32  ;;  %v373_v63 = vmax.f32 %v357_v55, 0.0 }
 0x101   :  { %v356_v62 = vadd.f32 %v340_v57, %v240_v61  ;;  %v371_v1 = vmax.f32 %v355_v58, 0.0 }
 0x102   :  { %v374_v0 = vmax.f32 %v358_v60, 0.0 }
 0x103   :  { %v372_v2 = vmax.f32 %v356_v62, 0.0 }
 0x104   :  { %v386_v4 = vpack.c.bf16 %v374_v0, %v373_v63 }
 0x105   :  { %v385_v6 = vpack.c.bf16 %v372_v2, %v371_v1  ;;  %v881_v7 = vpop.f32.mrb[8].mxu0 }
 0x106   :  { %v361_v9 = vadd.f32 %v881_v7, %v345_v3  ;;  %v253_v10 = vpop.f32.mrb[9].mxu0 }
 0x107   :  { %530 = vmatmul.mubr.bf16.gmra.mrb[20].mxu0 %v384_v50  ;;  %540 = vmatmul.mubr.bf16.vlgmr.msra.gmra.mrb[0].mxu1 %v385_v6  ;;  %v359_v12 = vadd.f32 %v343_v5, %v253_v10  ;;  %v882_v13 = vpop.f32.mrb[10].mxu0 }
 0x108   :  { %v377_v14 = vmax.f32 %v361_v9, 0.0  ;;  %v362_v15 = vadd.f32 %v882_v13, %v346_v8  ;;  %v256_v16 = vpop.f32.mrb[11].mxu0  ;;  %549 = vmatprep.mubr.bf16.mxu1 %v944_v32 }
 0x109   :  { %v375_v17 = vmax.f32 %v359_v12, 0.0  ;;  %v360_v18 = vadd.f32 %v344_v11, %v256_v16 }
 0x10a   :  { %v378_v19 = vmax.f32 %v362_v15, 0.0 }
 0x10b   :  { %v376_v20 = vmax.f32 %v360_v18, 0.0 }
 0x10c   :  { %v388_v22 = vpack.c.bf16 %v378_v19, %v377_v14 }
 0x10d   :  { %v387_v24 = vpack.c.bf16 %v376_v20, %v375_v17  ;;  %v885_v25 = vpop.f32.mrb[12].mxu0 }
 0x10e   :  { %v365_v27 = vadd.f32 %v885_v25, %v349_v21  ;;  %v269_v28 = vpop.f32.mrb[13].mxu0 }
 0x10f   :  { %550 = vmatmul.mubr.bf16.gmra.mrb[4].mxu1 %v386_v4  ;;  %v363_v30 = vadd.f32 %v347_v23, %v269_v28  ;;  %v886_v31 = vpop.f32.mrb[14].mxu0 }
 0x110   :  { %559 = vmatprep.mubr.bf16.mxu1 %v944_v32  ;;  %v381_v33 = vmax.f32 %v365_v27, 0.0  ;;  %v366_v34 = vadd.f32 %v886_v31, %v350_v26  ;;  %v272_v35 = vpop.f32.mrb[15].mxu0 }
 0x111   :  { %v379_v36 = vmax.f32 %v363_v30, 0.0  ;;  %v364_v37 = vadd.f32 %v348_v29, %v272_v35 }
 0x112   :  { %v382_v38 = vmax.f32 %v366_v34, 0.0 }
 0x113   :  { %v380_v39 = vmax.f32 %v364_v37, 0.0 }
 0x114   :  { %v390_v40 = vpack.c.bf16 %v382_v38, %v381_v33 }
 0x115   :  { %v389_v41 = vpack.c.bf16 %v380_v39, %v379_v36 }
 0x117   :  { %560 = vmatmul.mubr.bf16.gmra.mrb[8].mxu1 %v387_v24 }
 0x118   :  { %569 = vmatprep.mubr.bf16.mxu1 %v944_v32 }
 0x11f   :  { %570 = vmatmul.mubr.bf16.gmra.mrb[12].mxu1 %v388_v22 }
 0x120   :  { %579 = vmatprep.mubr.bf16.mxu1 %v944_v32 }
 0x127   :  { %580 = vmatmul.mubr.bf16.gmra.mrb[16].mxu1 %v389_v41 }
 0x128   :  { %589 = vmatprep.mubr.bf16.mxu1 %v944_v32 }
 0x12f   :  { %590 = vmatmul.mubr.bf16.gmra.mrb[20].mxu1 %v390_v40 }
 0x1d2   :  { %v521_v43 = vpop.f32.mrb[16].mxu0 }
 0x1d3   :  { %v523_v44 = vpop.f32.mrb[17].mxu0 }
 0x1d4   :  { %v687_v45 = vadd.f32 %v1135_v42, %v523_v44  ;;  %v525_v46 = vpop.f32.mrb[18].mxu0 }
 0x1d5   :  { %v795_v47 = vpack.c.bf16 %v525_v46, %v521_v43  ;;  %v527_v48 = vpop.f32.mrb[19].mxu0 }
 0x1d6   :  { %703 = vst [vmem:[%s1230_s6] sm:$0xff] %v687_v45  ;;  %v688_v49 = vadd.f32 %v1135_v42, %v527_v48 }
 0x1d7   :  { %796 = vst [vmem:[%s1231_s5] sm:$0xff] %v795_v47  }
 0x1d8   :  { %704 = vst [vmem:[%s1230_s6 + $0x8] sm:$0xff] %v688_v49 }
 0x1da   :  { %v531_v32 = vpop.f32.mrb[20].mxu0  ;;  %v541_v50 = vpop.f32.mrb[0].mxu1 }
 0x1db   :  { %v533_v51 = vpop.f32.mrb[21].mxu0  ;;  %v543_v52 = vpop.f32.mrb[1].mxu1 }
 0x1dc   :  { %v689_v53 = vadd.f32 %v1135_v42, %v533_v51  ;;  %v691_v54 = vadd.f32 %v1135_v42, %v543_v52  ;;  %v535_v55 = vpop.f32.mrb[22].mxu0  ;;  %v545_v56 = vpop.f32.mrb[2].mxu1 }
 0x1dd   :  { %v800_v57 = vpack.c.bf16 %v535_v55, %v531_v32  ;;  %v805_v58 = vpack.c.bf16 %v545_v56, %v541_v50  ;;  %v537_v59 = vpop.f32.mrb[23].mxu0  ;;  %v547_v60 = vpop.f32.mrb[3].mxu1 }
 0x1de   :  { %705 = vst [vmem:[%s1230_s6 + $0x10] sm:$0xff] %v689_v53  ;;  %707 = vst [vmem:[%s1230_s6 + $0x20] sm:$0xff] %v691_v54  ;;  %v690_v61 = vadd.f32 %v1135_v42, %v537_v59  ;;  %v692_v62 = vadd.f32 %v1135_v42, %v547_v60 }
 0x1df   :  { %832 = vst [vmem:[%s1231_s5 + $0x8] sm:$0xff] %v800_v57   ;;  %833 = vst [vmem:[%s1231_s5 + $0x10] sm:$0xff] %v805_v58  }
 0x1e0   :  { %706 = vst [vmem:[%s1230_s6 + $0x18] sm:$0xff] %v690_v61  ;;  %708 = vst [vmem:[%s1230_s6 + $0x28] sm:$0xff] %v692_v62 }
 0x1e2   :  { %v551_v63 = vpop.f32.mrb[4].mxu1 }
 0x1e3   :  { %v553_v0 = vpop.f32.mrb[5].mxu1 }
 0x1e4   :  { %v693_v1 = vadd.f32 %v1135_v42, %v553_v0  ;;  %v555_v2 = vpop.f32.mrb[6].mxu1 }
 0x1e5   :  { %v810_v3 = vpack.c.bf16 %v555_v2, %v551_v63  ;;  %v557_v4 = vpop.f32.mrb[7].mxu1 }
 0x1e6   :  { %709 = vst [vmem:[%s1230_s6 + $0x30] sm:$0xff] %v693_v1  ;;  %v694_v5 = vadd.f32 %v1135_v42, %v557_v4 }
 0x1e7   :  { %834 = vst [vmem:[%s1231_s5 + $0x18] sm:$0xff] %v810_v3  }
 0x1e8   :  { %710 = vst [vmem:[%s1230_s6 + $0x38] sm:$0xff] %v694_v5 }
 0x1ea   :  { %v561_v6 = vpop.f32.mrb[8].mxu1 }
 0x1eb   :  { %v563_v7 = vpop.f32.mrb[9].mxu1 }
 0x1ec   :  { %v695_v8 = vadd.f32 %v1135_v42, %v563_v7  ;;  %v565_v9 = vpop.f32.mrb[10].mxu1 }
 0x1ed   :  { %v815_v10 = vpack.c.bf16 %v565_v9, %v561_v6  ;;  %v567_v11 = vpop.f32.mrb[11].mxu1 }
 0x1ee   :  { %711 = vst [vmem:[%s1230_s6 + $0x40] sm:$0xff] %v695_v8  ;;  %v696_v12 = vadd.f32 %v1135_v42, %v567_v11 }
 0x1ef   :  { %835 = vst [vmem:[%s1231_s5 + $0x20] sm:$0xff] %v815_v10  }
 0x1f0   :  { %712 = vst [vmem:[%s1230_s6 + $0x48] sm:$0xff] %v696_v12 }
 0x1f2   :  { %v571_v13 = vpop.f32.mrb[12].mxu1 }
 0x1f3   :  { %v573_v14 = vpop.f32.mrb[13].mxu1 }
 0x1f4   :  { %v697_v15 = vadd.f32 %v1135_v42, %v573_v14  ;;  %v575_v16 = vpop.f32.mrb[14].mxu1 }
 0x1f5   :  { %v820_v17 = vpack.c.bf16 %v575_v16, %v571_v13  ;;  %v577_v18 = vpop.f32.mrb[15].mxu1 }
 0x1f6   :  { %713 = vst [vmem:[%s1230_s6 + $0x50] sm:$0xff] %v697_v15  ;;  %v698_v19 = vadd.f32 %v1135_v42, %v577_v18 }
 0x1f7   :  { %836 = vst [vmem:[%s1231_s5 + $0x28] sm:$0xff] %v820_v17  }
 0x1f8   :  { %714 = vst [vmem:[%s1230_s6 + $0x58] sm:$0xff] %v698_v19 }
 0x1fa   :  { %v581_v20 = vpop.f32.mrb[16].mxu1 }
 0x1fb   :  { %v583_v21 = vpop.f32.mrb[17].mxu1 }
 0x1fc   :  { %v699_v22 = vadd.f32 %v1135_v42, %v583_v21  ;;  %v585_v23 = vpop.f32.mrb[18].mxu1 }
 0x1fd   :  { %v825_v24 = vpack.c.bf16 %v585_v23, %v581_v20  ;;  %v587_v25 = vpop.f32.mrb[19].mxu1 }
 0x1fe   :  { %715 = vst [vmem:[%s1230_s6 + $0x60] sm:$0xff] %v699_v22  ;;  %v700_v26 = vadd.f32 %v1135_v42, %v587_v25 }
 0x1ff   :  { %837 = vst [vmem:[%s1231_s5 + $0x30] sm:$0xff] %v825_v24  }
 0x200   :  { %716 = vst [vmem:[%s1230_s6 + $0x68] sm:$0xff] %v700_v26 }
 0x202   :  { %v591_v27 = vpop.f32.mrb[20].mxu1 }
 0x203   :  { %v593_v28 = vpop.f32.mrb[21].mxu1 }
 0x204   :  { %v701_v29 = vadd.f32 %v1135_v42, %v593_v28  ;;  %v595_v30 = vpop.f32.mrb[22].mxu1 }
 0x205   :  { %v830_v31 = vpack.c.bf16 %v595_v30, %v591_v27  ;;  %v597_v33 = vpop.f32.mrb[23].mxu1 }
 0x206   :  { %717 = vst [vmem:[%s1230_s6 + $0x70] sm:$0xff] %v701_v29  ;;  %v702_v34 = vadd.f32 %v1135_v42, %v597_v33 }
 0x207   :  { %838 = vst [vmem:[%s1231_s5 + $0x38] sm:$0xff] %v830_v31  }
 0x208   :  { %718 = vst [vmem:[%s1230_s6 + $0x78] sm:$0xff] %v702_v34 }

</bundles_post_ra>
